<compile_context>
chip_gen: v6e
topology: v6e:2x2x1
jax: 0.10.0
libtpu: 0.0.40
codegen_flags: <defaults>
</compile_context>

<pallas_src>
import jax
import jax.numpy as jnp
from jax.experimental import pallas as pl
from jax.experimental.pallas import tpu as pltpu


def _hbm_copy_kernel(x_hbm, out_hbm, sem):
    # One whole-array HBM->HBM DMA; no VMEM staging, no grid, no vld/vst.
    cp = pltpu.make_async_copy(x_hbm, out_hbm, sem)
    cp.start()
    cp.wait()


def _materialize_copy(x: jax.Array) -> jax.Array:
    """Physically distinct copy of `x` via a single HBM->HBM DMA."""
    return pl.pallas_call(
        _hbm_copy_kernel,
        out_shape=jax.ShapeDtypeStruct(x.shape, x.dtype),
        in_specs=[pl.BlockSpec(memory_space=pl.ANY)],
        out_specs=pl.BlockSpec(memory_space=pl.ANY),
        scratch_shapes=[pltpu.SemaphoreType.DMA],
    )(x)


def seasonality_block(x: jax.Array, *, materialize_forecast: bool = False):
    """Pallas implementation of SeasonalityBlock.forward.

    Returns (backcast, forecast).  The PyTorch reference returns the same
    tensor aliased twice, so by default both outputs alias `x` (zero cost).
    With materialize_forecast=True, the forecast is a physically distinct
    buffer produced by one direct HBM->HBM DMA.
    """
    if materialize_forecast:
        return x, _materialize_copy(x)
    return x, x


if __name__ == "__main__":
    key = jax.random.PRNGKey(0)

    # Small shapes consistent with the module: batch=8, backcast_length=128.
    x = jax.random.normal(key, (8, 128), dtype=jnp.float32)

    # Default (alias) path — matches `return (x, x)` exactly.
    b0, f0 = seasonality_block(x)
    jax.block_until_ready((b0, f0))
    assert b0.shape == x.shape and f0.shape == x.shape
    assert bool(jnp.all(b0 == x)) and bool(jnp.all(f0 == x))

    # Pallas DMA path — physically distinct forecast buffer.
    b1, f1 = seasonality_block(x, materialize_forecast=True)
    jax.block_until_ready((b1, f1))
    assert f1.shape == x.shape and f1.dtype == x.dtype
    assert bool(jnp.all(b1 == x)) and bool(jnp.all(f1 == x))

    # Non-128-multiple length and tiny batch (DMA copies whole array; no
    # tiling constraints apply).
    x2 = jax.random.normal(jax.random.PRNGKey(1), (4, 96), dtype=jnp.float32)
    b2, f2 = seasonality_block(x2, materialize_forecast=True)
    jax.block_until_ready((b2, f2))
    assert bool(jnp.all(b2 == x2)) and bool(jnp.all(f2 == x2))

    # bf16 input.
    x3 = jax.random.normal(jax.random.PRNGKey(2), (16, 128)).astype(jnp.bfloat16)
    b3, f3 = seasonality_block(x3, materialize_forecast=True)
    jax.block_until_ready((b3, f3))
    assert f3.dtype == jnp.bfloat16
    assert bool(jnp.all(b3 == x3)) and bool(jnp.all(f3 == x3))

    print("KERNEL_OK")
</pallas_src>

<mosaic_0001>
module attributes {stable_mosaic.version = 11 : i64} {
  func.func @_hbm_copy_kernel(%arg0: memref<8x128xf32, #tpu.memory_space<any>>, %arg1: memref<8x128xf32, #tpu.memory_space<any>>, %arg2: memref<!tpu.dma_semaphore, #tpu.memory_space<semaphore_mem>>) attributes {dimension_semantics = [], scalar_prefetch = 0 : i64, scratch_operands = 1 : i64, tpu.core_type = #tpu.core_type<tc>} {
    tpu.enqueue_dma source(%arg0 : memref<8x128xf32, #tpu.memory_space<any>>) target(%arg1 : memref<8x128xf32, #tpu.memory_space<any>>) target_semaphore(%arg2 : memref<!tpu.dma_semaphore, #tpu.memory_space<semaphore_mem>>)
    tpu.wait_dma2 semaphore(%arg2 : memref<!tpu.dma_semaphore, #tpu.memory_space<semaphore_mem>>) src(%arg0 : memref<8x128xf32, #tpu.memory_space<any>>) dst(%arg1 : memref<8x128xf32, #tpu.memory_space<any>>)
    return
  }
}

</mosaic_0001>

<bundles_post_ra>
// kernel: tpu_custom_call.1
= control target key start
LH: loop header
LB: loop body
LE: loop exit
PB: predicated region body
PF: predicated region fallthrough
CT: control target
= control target key end

     0   :  { %s28_s6 = smov [#allocation2]   ;;  %s29_s7 = smov 131072   ;;  %s47_s0 = inlined_call_operand.hbm [shape: f32[8,128], index: 0, kind: input, shape index: {}]   ;;  %s48_s1 = inlined_call_operand.hbm [shape: f32[8,128], index: 1, kind: output, shape index: {}]  }
   0x1   :  { %s30_s8 = smov 0  }
   0x2   :  { %12 = dma.general %s47_s0, 128, %s48_s1, %s28_s6, %s29_s7, [#allocation4], %s30_s8, 0  }
   0x3   :  { %26 = dma.done.wait [#allocation2], 128 }
   0x4   :  { %27 = vsyncadd [#allocation2], 4294967168 }
   0x5   :  { %16 = vsyncmov [#allocation2] }
   0x8   :  { %s17_s13 = vpop.sfrf %16 }
   0x9   :  { %p22_p0 = scmp.ne.s32.totalorder %s17_s13, 0 }
   0xb   :  { %21 = shalt.err (%p22_p0)  }

</bundles_post_ra>
